<compile_context>
chip_gen: v7x
topology: tpu7x:2x2x1
jax: 0.10.0
libtpu: 0.0.40
codegen_flags: <defaults>
</compile_context>

<pallas_src>
import jax
import jax.numpy as jnp
from jax import lax
from jax.experimental import pallas as pl
from jax.experimental.pallas import tpu as pltpu

_PAD = 128  # lane-padded width of each of the q / k projection segments
_MIB = 1024 * 1024


def _vmem_budget():
    """Generation-aware (budget_for_tq, vmem_limit_bytes)."""
    try:
        cap = int(pltpu.get_tpu_info().vmem_capacity_bytes)
    except Exception:
        cap = 64 * _MIB  # conservative (v7x-sized) fallback
    limit = max(32 * _MIB, min(cap - 16 * _MIB, 112 * _MIB))
    budget = max(24 * _MIB, limit - 12 * _MIB)
    return budget, limit


def _choose_tq(N, C, budget_bytes, max_tq=None):
    """Largest Q-row stripe whose per-step working set fits the VMEM budget."""
    WTOT = 2 * _PAD + C
    cap = N if max_tq is None else min(N, max_tq)
    cands = sorted(
        {t for t in (N, 2048, 1024, 512, 256, 128, 64, 32, 16, 8)
         if 0 < t <= cap and N % t == 0 and (t == N or t % 8 == 0)},
        reverse=True)
    if not cands:
        return N
    for t in cands:
        need = (4 * 2 * N * C              # x block (f32, double-buffered)
                + 4 * 2 * C * WTOT         # fused weight (double-buffered)
                + 4 * 2 * WTOT             # fused bias (double-buffered)
                + 2 * N * (_PAD + C)       # bf16 k / v VMEM scratch
                + 4 * N * (_PAD + C)       # transient f32 k/v result (qi == 0)
                + 4 * 2 * t * N            # attn output block (double-buffered)
                + 4 * 2 * t * C            # out output block (double-buffered)
                + 4 * 3 * t * N)           # live energy / exp / attn values
        if need <= budget_bytes:
            return t
    return cands[-1]


def _make_kernel(N, C, tq):
    def kernel(x_ref, wf_ref, bf_ref, out_ref, attn_ref, k_sc, v_sc):
        # x_ref block: (1, N, C)  -- full batch element, resident across qi.
        # wf_ref: (C, 2*_PAD + C) packed [Wq^T | Wk^T | Wv^T] (q/k zero-padded).
        # bf_ref: (1, 2*_PAD + C) packed biases (zero in padded columns).
        qi = pl.program_id(1)

        # Fused k|v projection, computed once per batch element and cached in
        # bf16 VMEM scratch that persists across the qi steps (qi axis is
        # "arbitrary" so this cross-step state is legal under megacore).
        @pl.when(qi == 0)
        def _():
            x = x_ref[0]                                              # (N, C)
            kv = jnp.dot(x, wf_ref[:, pl.ds(_PAD, _PAD + C)],
                         preferred_element_type=jnp.float32)
            kv = kv + bf_ref[:, pl.ds(_PAD, _PAD + C)]                # (N, 128+C)
            k_sc[...] = kv[:, 0:_PAD].astype(jnp.bfloat16)            # (N, 128)
            v_sc[...] = kv[:, _PAD:_PAD + C].astype(jnp.bfloat16)     # (N, C)

        # q projection only over this row stripe (no cross-step recompute).
        row0 = pl.multiple_of(qi * tq, tq)
        xq = x_ref[0, pl.ds(row0, tq), :]                             # (tq, C)
        q = jnp.dot(xq, wf_ref[:, pl.ds(0, _PAD)],
                    preferred_element_type=jnp.float32)
        q = q + bf_ref[:, pl.ds(0, _PAD)]                             # (tq, 128)

        # energy[i, j] = <q_i, k_j>; padded channels are exactly zero in both
        # operands (exactly representable in bf16), so the 128-deep bf16
        # contraction equals the C//8-deep one up to bf16 rounding.
        energy = lax.dot_general(q.astype(jnp.bfloat16), k_sc[...],
                                 (((1,), (1,)), ((), ())),
                                 preferred_element_type=jnp.float32)  # (tq, N)

        # numerically stable softmax over the last axis
        m = jnp.max(energy, axis=-1, keepdims=True)
        e = jnp.exp(energy - m)
        attn = e * pl.reciprocal(jnp.sum(e, axis=-1, keepdims=True), approx=True)

        attn_ref[0] = attn                                            # (tq, N)
        out_ref[0] = jnp.dot(attn.astype(jnp.bfloat16), v_sc[...],
                             preferred_element_type=jnp.float32)      # (tq, C)

    return kernel


def sa_block_forward(x_nchw, wq, bq, wk, bk, wv, bv, *, max_tq=None):
    """x_nchw: (B, C, H, W) f32.  wq/wk: (C//8, C, 1, 1), wv: (C, C, 1, 1),
    biases 1-D.  Returns (out (B, C, H, W), attention (B, N, N))."""
    B, C, H, W = x_nchw.shape
    N = H * W
    C8 = wq.shape[0]
    assert C8 <= _PAD and C >= 1
    WTOT = 2 * _PAD + C

    # 1x1 conv == per-pixel matmul over channels; present x as (B, N, C).
    x_t = jnp.transpose(x_nchw.reshape(B, C, N), (0, 2, 1))           # (B, N, C)

    # Fused + lane-padded projection weight / bias:  [Wq | Wk | Wv] with the
    # q and k segments zero-padded to 128 lanes each.
    wf = jnp.zeros((C, WTOT), jnp.float32)
    wf = wf.at[:, 0:C8].set(wq.reshape(C8, C).T)
    wf = wf.at[:, _PAD:_PAD + C8].set(wk.reshape(C8, C).T)
    wf = wf.at[:, 2 * _PAD:2 * _PAD + C].set(wv.reshape(C, C).T)
    bf = jnp.zeros((1, WTOT), jnp.float32)
    bf = bf.at[0, 0:C8].set(bq)
    bf = bf.at[0, _PAD:_PAD + C8].set(bk)
    bf = bf.at[0, 2 * _PAD:2 * _PAD + C].set(bv)

    budget, vmem_limit = _vmem_budget()
    tq = _choose_tq(N, C, budget, max_tq=max_tq)
    nq = N // tq
    kernel = _make_kernel(N, C, tq)

    out_bnc, attn = pl.pallas_call(
        kernel,
        out_shape=(
            jax.ShapeDtypeStruct((B, N, C), jnp.float32),
            jax.ShapeDtypeStruct((B, N, N), jnp.float32),
        ),
        grid_spec=pltpu.PrefetchScalarGridSpec(
            num_scalar_prefetch=0,
            grid=(B, nq),
            in_specs=[
                pl.BlockSpec((1, N, C), lambda b, qi: (b, 0, 0)),     # x (resident across qi)
                pl.BlockSpec((C, WTOT), lambda b, qi: (0, 0)),        # fused weights
                pl.BlockSpec((1, WTOT), lambda b, qi: (0, 0)),        # fused bias
            ],
            out_specs=[
                pl.BlockSpec((1, tq, C), lambda b, qi: (b, qi, 0)),   # out (B, N, C)
                pl.BlockSpec((1, tq, N), lambda b, qi: (b, qi, 0)),   # attention (B, N, N)
            ],
            scratch_shapes=[
                pltpu.VMEM((N, _PAD), jnp.bfloat16),                  # cached k
                pltpu.VMEM((N, C), jnp.bfloat16),                     # cached v
            ],
        ),
        compiler_params=pltpu.CompilerParams(
            # qi must be "arbitrary": k/v scratch carries state across qi.
            dimension_semantics=("parallel", "arbitrary"),
            vmem_limit_bytes=vmem_limit,
        ),
    )(x_t, wf, bf)

    # PyTorch: out.view(B, -1, H, W) on contiguous (B, N, C) == raw reshape.
    out = out_bnc.reshape(B, C, H, W)
    return out, attn


def _reference(x_nchw, wq, bq, wk, bk, wv, bv):
    B, C, H, W = x_nchw.shape
    C8 = wq.shape[0]
    xf = x_nchw.reshape(B, C, H * W)
    q = jnp.einsum('oc,bcn->bon', wq.reshape(C8, C), xf) + bq[None, :, None]
    k = jnp.einsum('oc,bcn->bon', wk.reshape(C8, C), xf) + bk[None, :, None]
    v = jnp.einsum('oc,bcn->bon', wv.reshape(C, C), xf) + bv[None, :, None]
    energy = jnp.einsum('bcn,bcm->bnm', q, k)               # (B, N, N)
    attn = jax.nn.softmax(energy, axis=-1)
    out = jnp.einsum('bnm,bcm->bnc', attn, v)               # (B, N, C)
    return out.reshape(B, C, H, W), attn


if __name__ == "__main__":
    # dim_in = 32 (so dim_in // 8 = 4), spatial 8x8 -> N = 64, batch = 2.
    B, C, H, W = 2, 32, 8, 8
    C8 = C // 8

    key = jax.random.PRNGKey(0)
    k1, k2, k3, k4, k5, k6, k7 = jax.random.split(key, 7)
    x = jax.random.normal(k1, (B, C, H, W), dtype=jnp.float32)
    wq = jax.random.normal(k2, (C8, C, 1, 1), dtype=jnp.float32) * 0.1
    bq = jax.random.normal(k3, (C8,), dtype=jnp.float32) * 0.1
    wk = jax.random.normal(k4, (C8, C, 1, 1), dtype=jnp.float32) * 0.1
    bk = jax.random.normal(k5, (C8,), dtype=jnp.float32) * 0.1
    wv = jax.random.normal(k6, (C, C, 1, 1), dtype=jnp.float32) * 0.1
    bv = jax.random.normal(k7, (C,), dtype=jnp.float32) * 0.1

    out_exp, attn_exp = _reference(x, wq, bq, wk, bk, wv, bv)

    # Path 1: default tq (here tq == N, nq == 1).
    out1, attn1 = jax.block_until_ready(
        sa_block_forward(x, wq, bq, wk, bk, wv, bv))
    # Path 2: force Q-row striping (nq > 1) to exercise the cached-k/v path.
    out2, attn2 = jax.block_until_ready(
        sa_block_forward(x, wq, bq, wk, bk, wv, bv, max_tq=16))

    # Tolerance 2e-2: energy and attn@V run with bf16 MXU operands (f32
    # accumulation) and the softmax uses the approximate EUP reciprocal; the
    # projections and softmax itself remain f32.
    for out, attn in ((out1, attn1), (out2, attn2)):
        assert out.shape == (B, C, H, W) and attn.shape == (B, H * W, H * W)
        assert jnp.allclose(out, out_exp, rtol=2e-2, atol=2e-2)
        assert jnp.allclose(attn, attn_exp, rtol=2e-2, atol=2e-2)

    print("KERNEL_OK")
</pallas_src>

<mosaic_0001>
module attributes {stable_mosaic.version = 11 : i64} {
  func.func @kernel(%arg0: i32, %arg1: i32, %arg2: memref<1x64x32xf32, #tpu.memory_space<vmem>>, %arg3: memref<32x288xf32, #tpu.memory_space<vmem>>, %arg4: memref<1x288xf32, #tpu.memory_space<vmem>>, %arg5: memref<1x64x32xf32, #tpu.memory_space<vmem>>, %arg6: memref<1x64x64xf32, #tpu.memory_space<vmem>>, %arg7: memref<64x128xbf16, #tpu.memory_space<vmem>>, %arg8: memref<64x32xbf16, #tpu.memory_space<vmem>>) attributes {dimension_semantics = [#tpu.dimension_semantics<parallel>, #tpu.dimension_semantics<arbitrary>], iteration_bounds = array<i64: 2, 1>, scalar_prefetch = 0 : i64, scratch_operands = 2 : i64, tpu.core_type = #tpu.core_type<tc>, window_params = [{transform_indices = @transform_0, window_bounds = array<i64: 1, 64, 32>}, {pipeline_mode = #tpu.pipeline_mode<synchronous>, transform_indices = @transform_1, window_bounds = array<i64: 32, 288>}, {pipeline_mode = #tpu.pipeline_mode<synchronous>, transform_indices = @transform_2, window_bounds = array<i64: 1, 288>}, {transform_indices = @transform_3, window_bounds = array<i64: 1, 64, 32>}, {transform_indices = @transform_4, window_bounds = array<i64: 1, 64, 64>}]} {
    %c0_i32 = arith.constant 0 : i32
    %0 = arith.cmpi eq, %arg1, %c0_i32 : i32
    %1 = arith.extui %0 : i1 to i32
    %c0_i32_0 = arith.constant 0 : i32
    %2 = arith.cmpi ne, %1, %c0_i32_0 : i32
    scf.if %2 {
      %c0_20 = arith.constant 0 : index
      %c0_21 = arith.constant 0 : index
      %c0_22 = arith.constant 0 : index
      %35 = vector.load %arg2[%c0_20, %c0_21, %c0_22] : memref<1x64x32xf32, #tpu.memory_space<vmem>>, vector<1x64x32xf32>
      %36 = vector.shape_cast %35 : vector<1x64x32xf32> to vector<64x32xf32>
      %c0_23 = arith.constant 0 : index
      %c128 = arith.constant 128 : index
      %37 = vector.load %arg3[%c0_23, %c128] : memref<32x288xf32, #tpu.memory_space<vmem>>, vector<32x160xf32>
      %cst_24 = arith.constant dense<0.000000e+00> : vector<64x160xf32>
      %38 = tpu.matmul %36, %37, %cst_24 {dimension_numbers = #tpu.dot_dimension_numbers<[1], [0], [0], [1], [0, 0, 1, 1], [], []>} : vector<64x32xf32>, vector<32x160xf32>, vector<64x160xf32> -> vector<64x160xf32>
      %c0_25 = arith.constant 0 : index
      %c128_26 = arith.constant 128 : index
      %39 = vector.load %arg4[%c0_25, %c128_26] : memref<1x288xf32, #tpu.memory_space<vmem>>, vector<1x160xf32>
      %40 = vector.broadcast %39 : vector<1x160xf32> to vector<64x160xf32>
      %41 = arith.addf %38, %40 : vector<64x160xf32>
      %42 = vector.extract_strided_slice %41 {offsets = [0, 0], sizes = [64, 128], strides = [1, 1]} : vector<64x160xf32> to vector<64x128xf32>
      %43 = arith.truncf %42 : vector<64x128xf32> to vector<64x128xbf16>
      %c0_27 = arith.constant 0 : index
      %c0_28 = arith.constant 0 : index
      %44 = vector.load %arg7[%c0_27, %c0_28] : memref<64x128xbf16, #tpu.memory_space<vmem>>, vector<64x128xbf16>
      tpu.vector_store %arg7[%c0_27, %c0_28], %43 {strides = array<i32>} : memref<64x128xbf16, #tpu.memory_space<vmem>>, vector<64x128xbf16>,
      %45 = vector.extract_strided_slice %41 {offsets = [0, 128], sizes = [64, 32], strides = [1, 1]} : vector<64x160xf32> to vector<64x32xf32>
      %46 = arith.truncf %45 : vector<64x32xf32> to vector<64x32xbf16>
      %c0_29 = arith.constant 0 : index
      %c0_30 = arith.constant 0 : index
      %47 = vector.load %arg8[%c0_29, %c0_30] : memref<64x32xbf16, #tpu.memory_space<vmem>>, vector<64x32xbf16>
      tpu.vector_store %arg8[%c0_29, %c0_30], %46 {strides = array<i32>} : memref<64x32xbf16, #tpu.memory_space<vmem>>, vector<64x32xbf16>,
    } else {
    }
    %c64_i32 = arith.constant 64 : i32
    %3 = arith.muli %arg1, %c64_i32 : i32
    %4 = tpu.assume_multiple %3, 64 : i32
    %c0 = arith.constant 0 : index
    %5 = arith.index_cast %4 : i32 to index
    %c0_1 = arith.constant 0 : index
    %6 = vector.load %arg2[%c0, %5, %c0_1] : memref<1x64x32xf32, #tpu.memory_space<vmem>>, vector<1x64x32xf32>
    %7 = vector.shape_cast %6 : vector<1x64x32xf32> to vector<64x32xf32>
    %c0_2 = arith.constant 0 : index
    %c0_3 = arith.constant 0 : index
    %8 = vector.load %arg3[%c0_2, %c0_3] : memref<32x288xf32, #tpu.memory_space<vmem>>, vector<32x128xf32>
    %cst = arith.constant dense<0.000000e+00> : vector<64x128xf32>
    %9 = tpu.matmul %7, %8, %cst {dimension_numbers = #tpu.dot_dimension_numbers<[1], [0], [0], [1], [0, 0, 1, 1], [], []>} : vector<64x32xf32>, vector<32x128xf32>, vector<64x128xf32> -> vector<64x128xf32>
    %c0_4 = arith.constant 0 : index
    %c0_5 = arith.constant 0 : index
    %10 = vector.load %arg4[%c0_4, %c0_5] : memref<1x288xf32, #tpu.memory_space<vmem>>, vector<1x128xf32>
    %11 = vector.broadcast %10 : vector<1x128xf32> to vector<64x128xf32>
    %12 = arith.addf %9, %11 : vector<64x128xf32>
    %13 = arith.truncf %12 : vector<64x128xf32> to vector<64x128xbf16>
    %c0_6 = arith.constant 0 : index
    %c0_7 = arith.constant 0 : index
    %14 = vector.load %arg7[%c0_6, %c0_7] : memref<64x128xbf16, #tpu.memory_space<vmem>>, vector<64x128xbf16>
    %cst_8 = arith.constant dense<0.000000e+00> : vector<64x64xf32>
    %15 = tpu.matmul %13, %14, %cst_8 {dimension_numbers = #tpu.dot_dimension_numbers<[1], [1], [0], [0], [0, 0, 1, 0], [], []>} : vector<64x128xbf16>, vector<64x128xbf16>, vector<64x64xf32> -> vector<64x64xf32>
    %cst_9 = arith.constant dense<0xFF800000> : vector<64xf32>
    %16 = vector.multi_reduction <maximumf>, %15, %cst_9 [1] : vector<64x64xf32> to vector<64xf32>
    %17 = vector.shape_cast %16 : vector<64xf32> to vector<64x1xf32>
    %18 = vector.broadcast %17 : vector<64x1xf32> to vector<64x64xf32>
    %19 = arith.subf %15, %18 : vector<64x64xf32>
    %20 = math.exp %19 : vector<64x64xf32>
    %cst_10 = arith.constant dense<0.000000e+00> : vector<64xf32>
    %21 = vector.multi_reduction <add>, %20, %cst_10 [1] : vector<64x64xf32> to vector<64xf32>
    %22 = vector.shape_cast %21 : vector<64xf32> to vector<64x1xf32>
    %23 = tpu.reciprocal %22 {approx = true} : vector<64x1xf32> -> vector<64x1xf32>
    %24 = vector.broadcast %23 : vector<64x1xf32> to vector<64x64xf32>
    %25 = arith.mulf %20, %24 : vector<64x64xf32>
    %c0_11 = arith.constant 0 : index
    %c0_12 = arith.constant 0 : index
    %c0_13 = arith.constant 0 : index
    %26 = vector.load %arg6[%c0_11, %c0_12, %c0_13] : memref<1x64x64xf32, #tpu.memory_space<vmem>>, vector<1x64x64xf32>
    %27 = vector.shape_cast %26 : vector<1x64x64xf32> to vector<64x64xf32>
    %28 = vector.shape_cast %25 : vector<64x64xf32> to vector<1x64x64xf32>
    tpu.vector_store %arg6[%c0_11, %c0_12, %c0_13], %28 {strides = array<i32>} : memref<1x64x64xf32, #tpu.memory_space<vmem>>, vector<1x64x64xf32>,
    %29 = arith.truncf %25 : vector<64x64xf32> to vector<64x64xbf16>
    %c0_14 = arith.constant 0 : index
    %c0_15 = arith.constant 0 : index
    %30 = vector.load %arg8[%c0_14, %c0_15] : memref<64x32xbf16, #tpu.memory_space<vmem>>, vector<64x32xbf16>
    %cst_16 = arith.constant dense<0.000000e+00> : vector<64x32xf32>
    %31 = tpu.matmul %29, %30, %cst_16 {dimension_numbers = #tpu.dot_dimension_numbers<[1], [0], [0], [1], [0, 0, 1, 1], [], []>} : vector<64x64xbf16>, vector<64x32xbf16>, vector<64x32xf32> -> vector<64x32xf32>
    %c0_17 = arith.constant 0 : index
    %c0_18 = arith.constant 0 : index
    %c0_19 = arith.constant 0 : index
    %32 = vector.load %arg5[%c0_17, %c0_18, %c0_19] : memref<1x64x32xf32, #tpu.memory_space<vmem>>, vector<1x64x32xf32>
    %33 = vector.shape_cast %32 : vector<1x64x32xf32> to vector<64x32xf32>
    %34 = vector.shape_cast %31 : vector<64x32xf32> to vector<1x64x32xf32>
    tpu.vector_store %arg5[%c0_17, %c0_18, %c0_19], %34 {strides = array<i32>} : memref<1x64x32xf32, #tpu.memory_space<vmem>>, vector<1x64x32xf32>,
    return
  }
  func.func @transform_0(%arg0: i32, %arg1: i32) -> (i32, i32, i32) {
    %c0_i32 = arith.constant 0 : i32
    %c0_i32_0 = arith.constant 0 : i32
    %c0_i32_1 = arith.constant 0 : i32
    return %arg0, %c0_i32, %c0_i32_0 : i32, i32, i32
  }
  func.func @transform_1(%arg0: i32, %arg1: i32) -> (i32, i32) {
    %c0_i32 = arith.constant 0 : i32
    %c0_i32_0 = arith.constant 0 : i32
    %c0_i32_1 = arith.constant 0 : i32
    return %c0_i32, %c0_i32_0 : i32, i32
  }
  func.func @transform_2(%arg0: i32, %arg1: i32) -> (i32, i32) {
    %c0_i32 = arith.constant 0 : i32
    %c0_i32_0 = arith.constant 0 : i32
    %c0_i32_1 = arith.constant 0 : i32
    return %c0_i32, %c0_i32_0 : i32, i32
  }
  func.func @transform_3(%arg0: i32, %arg1: i32) -> (i32, i32, i32) {
    %c0_i32 = arith.constant 0 : i32
    %c0_i32_0 = arith.constant 0 : i32
    return %arg0, %arg1, %c0_i32 : i32, i32, i32
  }
  func.func @transform_4(%arg0: i32, %arg1: i32) -> (i32, i32, i32) {
    %c0_i32 = arith.constant 0 : i32
    %c0_i32_0 = arith.constant 0 : i32
    return %arg0, %arg1, %c0_i32 : i32, i32, i32
  }
}

</mosaic_0001>

<bundles_post_ra>
// kernel: tpu_custom_call.1
= control target key start
LH: loop header
LB: loop body
LE: loop exit
PB: predicated region body
PF: predicated region fallthrough
CT: control target
= control target key end

     0   :  { %10 = vsyncpa [#allocation5], 0  ;;  %s1572_s0 = inlined_call_operand.vmem [shape: f32[2,64,32], index: 0, kind: input, shape index: {}]   ;;  %s1573_s1 = inlined_call_operand.vmem [shape: f32[32,288], index: 1, kind: input, shape index: {}]   ;;  %s1574_s2 = inlined_call_operand.vmem [shape: f32[1,288], index: 2, kind: input, shape index: {}]   ;;  %s1575_s3 = inlined_call_operand.vmem [shape: f32[2,64,32], index: 3, kind: output, shape index: {0}]   ;;  %s1576_s4 = inlined_call_operand.hbm [shape: f32[2,64,64], index: 4, kind: output, shape index: {1}]  }
   0x1   :  { %12 = vsyncpa [#allocation5 + $0x1], 0  ;;  %s1311_s15 = smov 0   ;;  %s1313_s16 = smov 0  }
   0x2   :  { %s1315_s17 = smov 0   ;;  %s1317_s18 = smov 0  }
   0x3   :  { %s1319_s19 = smov 0   ;;  %s1321_s20 = smov 0  }
   0x4 LB: > { %s977_s21 = sadd.s32 4294967295, %s1280_s20   ;;  %s978_s22 = sadd.s32 4294967294, %s1280_s20   ;;  %s1280_s20 = sphi %s1321_s20, %s18_s20   ;;  %s1276_s19 = sphi %s1319_s19, %s1583_s19   ;;  %s1272_s18 = sphi %s1317_s18, %s1582_s18   ;;  %s1268_s17 = sphi %s1315_s17, %s1581_s17   ;;  %s1264_s16 = sphi %s1313_s16, %s1580_s16   ;;  %s1260_s15 = sphi %s1311_s15, %s1579_s15  }
   0x5   : > { %s30_s23 = sadd.s32 1, %s1276_s19  ;;  %s135_s24 = sadd.s32 1, %s1268_s17 }
   0x6   : > { %p32_p0 = scmp.ge.s32.totalorder %s30_s23, 2  ;;  %p145_p1 = scmp.ne.s32.totalorder %s1268_s17, %s1264_s16 }
   0x7   : > { %p146_p2 = scmp.eq.s32.totalorder %s977_s21, 1  ;;  %p151_p3 = scmp.ne.s32.totalorder %s1264_s16, %s1260_s15 }
   0x8   : > { %s1585_s23 = smov (%p32_p0, %s30_s23), 0  ;;  %p152_p5 = scmp.eq.s32.totalorder %s978_s22, 1 }
   0x9   : > { %p1351_p4 = por %p146_p2, %p145_p1  ;;  %s130_s26 = ssub.s32 %s1276_s19, %s1585_s23 }
   0xa   : > { %p981_p6 = scmp.ge.s32.totalorder %s1280_s20, 1  ;;  %p133_p7 = scmp.eq.s32.totalorder %s130_s26, 0 }
   0xb   : > { %p1358_p8 = por %p152_p5, %p151_p3  ;;  %p184_p9 = scmp.lt.s32.totalorder %s1280_s20, 3 }
   0xc   : > { %s1364_s28 = scalar_select %p133_p7, %s1268_s17, %s135_s24  }
   0xd   : > { %p185_p10 = pnand %p981_p6, %p184_p9 }
   0xe   : > { %v249_v0 = vld [vmem:[%s1573_s1 + $0x10] sm:$0xff] (!%p185_p10)  ;;  %v251_v1 = vld [vmem:[%s1573_s1 + $0x28] sm:$0xff] (!%p185_p10)  ;;  %p219_p11 = scmp.lt.s32.totalorder (!%p185_p10), %s1272_s18, 1  ;;  %v250_v4 = vld [vmem:[%s1573_s1 + $0x20] sm:$0xff] (!%p185_p10)  ;;  %v1282_v7 = vmov (!%p185_p10), 0.0   ;;  %vm268_vm0 = vcmask (!%p185_p10), 261120   ;;  %v258_v27 = vlaneseq (!%p185_p10) }
   0xf   : > { %188 = sbr.rel (%p185_p10) target bundleno = 1041 (0x411), region = 32  ;;  %v248_v2 = vld [vmem:[%s1573_s1 + $0x8] sm:$0xff] (!%p185_p10)  ;;  %v1096_v3 = vpack.c.bf16 (!%p185_p10), %v251_v1, %v249_v0  ;;  %v253_v5 = vld [vmem:[%s1573_s1 + $0x40] sm:$0xff] (!%p185_p10)  ;;  %v255_v6 = vld [vmem:[%s1573_s1 + $0x58] sm:$0xff] (!%p185_p10)  ;;  %357 = vmatprep.mubr.f32.mxu0 (!%p185_p10), %v1282_v7  ;;  %vm646_vm1 = vcmask (!%p185_p10), 523264   ;;  %s216_s5 = sand.u32 (!%p185_p10), 1, %s1264_s16  }
  0x10   : > { %v1098_v8 = vpack.c.bf16 (!%p185_p10), %v250_v4, %v248_v2  ;;  %v1100_v9 = vpack.c.bf16 (!%p185_p10), %v255_v6, %v253_v5  ;;  %v252_v10 = vld [vmem:[%s1573_s1 + $0x38] sm:$0xff] (!%p185_p10)  ;;  %v254_v11 = vld [vmem:[%s1573_s1 + $0x50] sm:$0xff] (!%p185_p10)  ;;  %v432_v12 = vld [vmem:[%s1573_s1] sm:$0xff] (!%p185_p10)  ;;  %v259_v28 = vshrl.u32 (!%p185_p10), %v258_v27, 7  ;;  %s982_s6 = sshll.u32 (!%p185_p10), %s216_s5, 6  ;;  %s1015_s8 = sshll.u32 (!%p185_p10), %s1272_s18, 10 }
  0x11   : > { %1097 = vmatprep.subr.bf16.mxu0 (!%p185_p10), %v1096_v3  ;;  %v433_v13 = vld [vmem:[%s1573_s1 + $0x18] sm:$0xff] (!%p185_p10)  ;;  %v434_v14 = vld [vmem:[%s1573_s1 + $0x30] sm:$0xff] (!%p185_p10)  ;;  %v435_v15 = vld [vmem:[%s1573_s1 + $0x48] sm:$0xff] (!%p185_p10)  ;;  %v1102_v16 = vpack.c.bf16 (!%p185_p10), %v254_v11, %v252_v10  ;;  %s1480_s7 = scalar_lea.vmem (!%p185_p10), [#allocation4], %s982_s6  ;;  %s1507_s13 = scalar_lea.hbm (!%p185_p10), %s1576_s4, %s1015_s8 }
  0x12   : > { %1099 = vmatpush1.bf16.msra.mxu0 (!%p185_p10), %v1098_v8  ;;  %v1104_v17 = vpack.c.bf16 (!%p185_p10), %v433_v13, %v432_v12  ;;  %v1108_v18 = vpack.c.bf16 (!%p185_p10), %v435_v15, %v434_v14  ;;  %v260_v29 = vsub.s32 (!%p185_p10), 0, %v259_v28  ;;  %v256_v30 = vld [vmem:[%s1574_s2 + $0x1] sm:$0x3] (!%p185_p10)  ;;  %v264_v31 = vsub.s32 (!%p185_p10), 1, %v259_v28  ;;  %v995_v35 = vld [vmem:[%s1574_s2] ss:$0 sm:$0xff] (!%p185_p10) }
  0x13   : > { %1101 = vmatprep.subr.bf16.mxu0 (!%p185_p10), %v1100_v9  ;;  %s865_s9 = sshll.u32 (!%p185_p10), %s1480_s7, 4  ;;  %s1513_s14 = scalar_lea.sflag (!%p185_p10), [#allocation5], %s216_s5  ;;  %s1509_s9 = int_to_ptr.vmem [resolvable:$true] %s865_s9 }
  0x14   : > { %1105 = vmatprep.subr.bf16.mxu1 (!%p185_p10), %v1104_v17  ;;  %v1431_v33 = vrot.slane (!%p185_p10), %v256_v30, %v260_v29  ;;  %v1436_v36 = vrot.slane (!%p185_p10), %v256_v30, %v264_v31 }
  0x15   : > { %1107 = vmatpush3.bf16.msra.mxu1 (!%p185_p10), %v1104_v17 }
  0x16   : > { %s1392_s29 = scalar_select %p219_p11, %s1272_s18, 1  ;;  %1103 = vmatpush1.bf16.msra.mxu0 %v1102_v16  ;;  %1109 = vmatprep.subr.bf16.mxu1 %v1108_v18 }
  0x17   : > { %s1283_s18 = smov [#allocation4]  }
  0x18   : > { %s1013_s12 = sshll.u32 %s1392_s29, 6  ;;  %s1206_s22 = sshll.u32 %s1283_s18, 4  ;;  %s1207_s22 = int_to_ptr.vmem [resolvable:$false] %s1206_s22 }
  0x19   : > { %s223_s21 = scalar_lea.vmem %s1572_s0, %s1013_s12  ;;  %1111 = vmatpush3.bf16.msra.mxu1 %v1108_v18  ;;  %s1208_s24 = scalar_lea.vmem %s1207_s22, 2048 }
  0x1a   : > { %v240_v19 = vld [vmem:[%s223_s21] sm:$0xff]  ;;  %v241_v20 = vld [vmem:[%s223_s21 + $0x8] sm:$0xff]  ;;  %v242_v21 = vld [vmem:[%s223_s21 + $0x10] sm:$0xff]  ;;  %p1209_p1 = scmp.lt.s32.totalorder %s1509_s9, %s1207_s22 }
  0x1b   : > { %1052 = vmatprep.mubr.msk.f32.mxu1 %vm268_vm0, %v240_v19  ;;  %987 = vmatmul.mubr.msk.f32.vlgmr.msra.gmra.mrb[0].mxu0 %vm268_vm0, %v240_v19  ;;  %v243_v22 = vld [vmem:[%s223_s21 + $0x18] sm:$0xff]  ;;  %v244_v23 = vld [vmem:[%s223_s21 + $0x20] sm:$0xff]  ;;  %v245_v24 = vld [vmem:[%s223_s21 + $0x28] sm:$0xff] }
  0x1c   : > { %363 = vmatprep.mubr.f32.mxu0 %v1282_v7  ;;  %1053 = vmatmul.mubr.msk.f32.vlgmr.msra.gmra.mrb[0].mxu1 %vm268_vm0, %v241_v20  ;;  %v246_v25 = vld [vmem:[%s223_s21 + $0x30] sm:$0xff]  ;;  %v247_v26 = vld [vmem:[%s223_s21 + $0x38] sm:$0xff]  ;;  %s1202_s21 = scalar_lea.vmem %s1509_s9, 1024 }
  0x1d   : > { %1055 = vmatprep.mubr.msk.f32.mxu1 %vm268_vm0, %v242_v21  ;;  %p1203_p12 = scmp.ne.s32.totalorder %s1509_s9, %s1202_s21  ;;  %p1210_p2 = scmp.lt.s32.totalorder %s1208_s24, %s1202_s21 }
  0x1f   : > { %988 = vmatmul.mubr.msk.f32.gmra.mrb[2].mxu0 %vm268_vm0, %v241_v20  ;;  %p1204_p13 = pnand %p1203_p12, %p1351_p4  ;;  %p1211_p3 = por %p1210_p2, %p1209_p1 }
  0x20   : > { %369 = vmatprep.mubr.f32.mxu0 %v1282_v7  ;;  %1056 = vmatmul.mubr.msk.f32.gmra.mrb[2].mxu1 %vm268_vm0, %v243_v22 }
  0x21   : > { %1058 = vmatprep.mubr.msk.f32.mxu1 %vm268_vm0, %v244_v23  ;;  %p1205_p0 = pneg %p1204_p13 }
  0x23   : > { %989 = vmatmul.mubr.msk.f32.gmra.mrb[4].mxu0 %vm268_vm0, %v242_v21  ;;  %p1212_p5 = pnand %p1211_p3, %p1205_p0 }
  0x24   : > { %375 = vmatprep.mubr.f32.mxu0 %v1282_v7  ;;  %1059 = vmatmul.mubr.msk.f32.gmra.mrb[4].mxu1 %vm268_vm0, %v245_v24 }
  0x25   : > { %1061 = vmatprep.mubr.msk.f32.mxu1 %vm268_vm0, %v246_v25 }
  0x27   : > { %990 = vmatmul.mubr.msk.f32.gmra.mrb[6].mxu0 %vm268_vm0, %v243_v22 }
  0x28   : > { %381 = vmatprep.mubr.f32.mxu0 %v1282_v7  ;;  %1062 = vmatmul.mubr.msk.f32.gmra.mrb[6].mxu1 %vm268_vm0, %v247_v26 }
  0x2b   : > { %991 = vmatmul.mubr.msk.f32.gmra.mrb[8].mxu0 %vm268_vm0, %v244_v23 }
  0x2c   : > { %387 = vmatprep.mubr.f32.mxu0 %v1282_v7 }
  0x2f   : > { %992 = vmatmul.mubr.msk.f32.gmra.mrb[10].mxu0 %vm268_vm0, %v245_v24 }
  0x30   : > { %393 = vmatprep.mubr.f32.mxu0 %v1282_v7 }
  0x33   : > { %993 = vmatmul.mubr.msk.f32.gmra.mrb[12].mxu0 %vm268_vm0, %v246_v25 }
  0x34   : > { %399 = vmatprep.mubr.f32.mxu0 %v1282_v7 }
  0x37   : > { %994 = vmatmul.mubr.msk.f32.gmra.mrb[14].mxu0 %vm268_vm0, %v247_v26 }
  0xee   : > { %v359_v32 = vpop.f32.mrb[0].mxu0 }
  0xef   : > { %v361_v34 = vpop.f32.mrb[1].mxu0  ;;  %v1054_v37 = vpop.f32.mrb[0].mxu1  ;;  %v360_v41 = vadd.f32 %v359_v32, %v1431_v33 }
  0xf0   : > { %v540_v39 = vadd.f32 %v1054_v37, %v995_v35  ;;  %v534_v40 = vpop.f32.mrb[1].mxu1  ;;  %v362_v45 = vadd.f32 %v361_v34, %v1436_v36 }
  0xf1   : > { %v535_v44 = vadd.f32 %v995_v35, %v534_v40 }
  0xf2   : > { %v365_v38 = vpop.f32.mrb[2].mxu0 }
  0xf3   : > { %v366_v42 = vadd.f32 %v365_v38, %v1431_v33  ;;  %v367_v43 = vpop.f32.mrb[3].mxu0  ;;  %v573_v48 = vpack.c.bf16 %v540_v39, %v535_v44  ;;  %v1057_v49 = vpop.f32.mrb[2].mxu1 }
  0xf4   : > { %v368_v46 = vadd.f32 %v367_v43, %v1436_v36  ;;  %v1442_v52 = vadd.f32 %v1057_v49, %v995_v35  ;;  %v544_v53 = vpop.f32.mrb[3].mxu1 }
  0xf5   : > { %v406_v47 = vpack.c.bf16 %v366_v42, %v360_v41  ;;  %v545_v55 = vadd.f32 %v995_v35, %v544_v53  ;;  %1072 = vmatprep.mubr.bf16.mxu0 %v573_v48 }
  0xf6   : > { %v414_v50 = vpack.c.bf16 %v368_v46, %v362_v45  ;;  %v371_v51 = vpop.f32.mrb[4].mxu0 }
  0xf7   : > { %v373_v54 = vpop.f32.mrb[5].mxu0  ;;  %1064 = vmatprep.subr.bf16.mxu0 %v406_v47  ;;  %v574_v56 = vpack.c.bf16 %v1442_v52, %v545_v55  ;;  %v1060_v57 = vpop.f32.mrb[4].mxu1  ;;  %v372_v61 = vadd.f32 %v371_v51, %v1431_v33 }
  0xf8   : > { %418 = vst.msk [vmem:[#allocation3] sm:$0xff] %vm268_vm0, %v414_v50  ;;  %1065 = vmatpush3.bf16.xpose.msra.mxu0 %v406_v47  ;;  %v560_v59 = vadd.f32 %v1060_v57, %v995_v35  ;;  %v554_v60 = vpop.f32.mrb[5].mxu1  ;;  %v374_v1 = vadd.f32 %v373_v54, %v1436_v36 }
  0xf9   : > { %v555_v0 = vadd.f32 %v995_v35, %v554_v60 }
  0xfa   : > { %v377_v58 = vpop.f32.mrb[6].mxu0 }
  0xfb   : > { %v378_v62 = vadd.f32 %v377_v58, %v1431_v33  ;;  %v379_v63 = vpop.f32.mrb[7].mxu0  ;;  %v575_v4 = vpack.c.bf16 %v560_v59, %v555_v0  ;;  %v1063_v5 = vpop.f32.mrb[6].mxu1 }
  0xfc   : > { %v380_v2 = vadd.f32 %v379_v63, %v1436_v36  ;;  %v570_v8 = vadd.f32 %v1063_v5, %v995_v35  ;;  %v564_v9 = vpop.f32.mrb[7].mxu1 }
  0xfd   : > { %v407_v3 = vpack.c.bf16 %v378_v62, %v372_v61  ;;  %v565_v12 = vadd.f32 %v995_v35, %v564_v9 }
  0xfe   : > { %v415_v6 = vpack.c.bf16 %v380_v2, %v374_v1  ;;  %v383_v7 = vpop.f32.mrb[8].mxu0 }
  0xff   : > { %v385_v10 = vpop.f32.mrb[9].mxu0  ;;  %1066 = vmatprep.subr.bf16.mxu0 %v407_v3  ;;  %v747_v11 = vld [vmem:[#allocation3] sm:$0xff]  ;;  %v576_v13 = vpack.c.bf16 %v570_v8, %v565_v12  ;;  %v384_v15 = vadd.f32 %v383_v7, %v1431_v33 }
 0x100   : > { %419 = vst.msk [vmem:[#allocation3 + $0x8] sm:$0xff] %vm268_vm0, %v415_v6  ;;  %1067 = vmatpush3.bf16.xpose.msra.mxu0 %v407_v3  ;;  %1080 = vmatprep.subr.bf16.mxu1 %v747_v11  ;;  %v386_v18 = vadd.f32 %v385_v10, %v1436_v36 }
 0x101   : > { %1081 = vmatpush3.bf16.msra.mxu1 %v747_v11 }
 0x102   : > { %v389_v14 = vpop.f32.mrb[10].mxu0 }
 0x103   : > { %v390_v16 = vadd.f32 %v389_v14, %v1431_v33  ;;  %v391_v17 = vpop.f32.mrb[11].mxu0 }
 0x104   : > { %v392_v19 = vadd.f32 %v391_v17, %v1436_v36 }
 0x105   : > { %v408_v20 = vpack.c.bf16 %v390_v16, %v384_v15 }
 0x106   : > { %v416_v21 = vpack.c.bf16 %v392_v19, %v386_v18  ;;  %v395_v22 = vpop.f32.mrb[12].mxu0 }
 0x107   : > { %v397_v23 = vpop.f32.mrb[13].mxu0  ;;  %1068 = vmatprep.subr.bf16.mxu0 %v408_v20  ;;  %v748_v24 = vld [vmem:[#allocation3 + $0x8] sm:$0xff]  ;;  %v396_v26 = vadd.f32 %v395_v22, %v1431_v33 }
 0x108   : > { %420 = vst.msk [vmem:[#allocation3 + $0x10] sm:$0xff] %vm268_vm0, %v416_v21  ;;  %1069 = vmatpush3.bf16.xpose.msra.mxu0 %v408_v20  ;;  %1082 = vmatprep.subr.bf16.mxu1 %v748_v24  ;;  %v398_v29 = vadd.f32 %v397_v23, %v1436_v36 }
 0x109   : > { %1083 = vmatpush3.bf16.msra.mxu1 %v748_v24 }
 0x10a   : > { %v401_v25 = vpop.f32.mrb[14].mxu0 }
 0x10b   : > { %v402_v27 = vadd.f32 %v401_v25, %v1431_v33  ;;  %v403_v28 = vpop.f32.mrb[15].mxu0 }
 0x10c   : > { %v404_v30 = vadd.f32 %v403_v28, %v1436_v36 }
 0x10d   : > { %v409_v31 = vpack.c.bf16 %v402_v27, %v396_v26 }
 0x10e   : > { %v417_v32 = vpack.c.bf16 %v404_v30, %v398_v29 }
 0x10f   : > { %1070 = vmatprep.subr.bf16.mxu0 %v409_v31  ;;  %v749_v34 = vld [vmem:[#allocation3 + $0x10] sm:$0xff] }
 0x110   : > { %421 = vst.msk [vmem:[#allocation3 + $0x18] sm:$0xff] %vm268_vm0, %v417_v32  ;;  %1071 = vmatpush3.bf16.xpose.msra.mxu0 %v409_v31  ;;  %1084 = vmatprep.subr.bf16.mxu1 %v749_v34 }
 0x111   : > { %1085 = vmatpush3.bf16.msra.mxu1 %v749_v34 }
 0x117   : > { %1073 = vmatmul.mubr.bf16.vlgmr.msra.gmra.mrb[16].mxu0 %v574_v56  ;;  %v750_v35 = vld [vmem:[#allocation3 + $0x18] sm:$0xff] }
 0x118   : > { %1086 = vmatprep.subr.bf16.mxu1 %v750_v35  ;;  %1076 = vmatprep.mubr.bf16.mxu0 %v575_v4 }
 0x119   : > { %1087 = vmatpush3.bf16.msra.mxu1 %v750_v35 }
 0x11f   : > { %1077 = vmatmul.mubr.bf16.gmra.mrb[20].mxu0 %v576_v13 }
 0x1ea   : > { %v1074_v33 = vpop.f32.mrb[16].mxu0 }
 0x1eb   : > { %v615_v37 = vpop.f32.mrb[17].mxu0  ;;  %v653_v36 = vsel %vm646_vm1, %v1074_v33, -inf }
 0x1ec   : > { %654 = vmax.xlane.f32.xlu1 %v653_v36  ;;  %v1075_v38 = vpop.f32.mrb[18].mxu0  ;;  %v647_v39 = vsel %vm646_vm1, %v615_v37, -inf }
 0x1ed   : > { %648 = vmax.xlane.f32.xlu0 %v647_v39  ;;  %v618_v40 = vpop.f32.mrb[19].mxu0  ;;  %v656_v41 = vsel %vm646_vm1, %v1075_v38, -inf }
 0x1ee   : > { %v650_v42 = vsel %vm646_vm1, %v618_v40, -inf }
 0x1f0   : > { %657 = vmax.xlane.f32.xlu1 %v656_v41 }
 0x1f1   : > { %651 = vmax.xlane.f32.xlu0 %v650_v42 }
 0x1f2   : > { %v1078_v43 = vpop.f32.mrb[20].mxu0 }
 0x1f3   : > { %v631_v44 = vpop.f32.mrb[21].mxu0  ;;  %v665_v49 = vsel %vm646_vm1, %v1078_v43, -inf }
 0x1f4   : > { %v1079_v45 = vpop.f32.mrb[22].mxu0  ;;  %v659_v46 = vsel %vm646_vm1, %v631_v44, -inf }
 0x1f5   : > { %660 = vmax.xlane.f32.xlu0 %v659_v46  ;;  %v634_v47 = vpop.f32.mrb[23].mxu0  ;;  %v668_v50 = vsel %vm646_vm1, %v1079_v45, -inf }
 0x1f6   : > { %v662_v48 = vsel %vm646_vm1, %v634_v47, -inf }
 0x1f7   : > { %663 = vmax.xlane.f32.xlu1 %v662_v48 }
 0x1f9   : > { %666 = vmax.xlane.f32.xlu0 %v665_v49 }
 0x1fb   : > { %669 = vmax.xlane.f32.xlu1 %v668_v50 }
 0x279   : > { %v655_v51 = vpop.xlane.xlu1 %654 }
 0x27a   : > { %v673_v52 = vsub.f32 %v1074_v33, %v655_v51  ;;  %v649_v53 = vpop.xlane.xlu0 %648 }
 0x27b   : > { %v671_v54 = vsub.f32 %v615_v37, %v649_v53 }
 0x27c   : > { %v683_v55 = vmul.f32 1.442695, %v673_v52 }
 0x27d   : > { %v679_v56 = vmul.f32 1.442695, %v671_v54  ;;  %v658_v57 = vpop.xlane.xlu1 %657 }
 0x27e   : > { %v674_v58 = vsub.f32 %v1075_v38, %v658_v57  ;;  %v652_v59 = vpop.xlane.xlu0 %651 }
 0x27f   : > { %1170 = vpow2.f32 %v679_v56  ;;  %v672_v60 = vsub.f32 %v618_v40, %v652_v59 }
 0x280   : > { %1172 = vpow2.f32 %v683_v55  ;;  %v685_v61 = vmul.f32 1.442695, %v674_v58 }
 0x281   : > { %v681_v62 = vmul.f32 1.442695, %v672_v60 }
 0x282   : > { %v661_v63 = vpop.xlane.xlu0 %660 }
 0x283   : > { %1174 = vpow2.f32 %v681_v62  ;;  %v675_v0 = vsub.f32 %v631_v44, %v661_v63 }
 0x284   : > { %v664_v1 = vpop.xlane.xlu1 %663  ;;  %1176 = vpow2.f32 %v685_v61 }
 0x285   : > { %v687_v2 = vmul.f32 1.442695, %v675_v0  ;;  %v676_v3 = vsub.f32 %v634_v47, %v664_v1 }
 0x286   : > { %v667_v4 = vpop.xlane.xlu0 %666 }
 0x287   : > { %1178 = vpow2.f32 %v687_v2  ;;  %v689_v5 = vmul.f32 1.442695, %v676_v3  ;;  %v677_v6 = vsub.f32 %v1078_v43, %v667_v4 }
 0x288   : > { %v670_v7 = vpop.xlane.xlu1 %669 }
 0x289   : > { %v1171_v8 = vpop.eup %1170  ;;  %1180 = vpow2.f32 %v689_v5  ;;  %v691_v9 = vmul.f32 1.442695, %v677_v6  ;;  %v678_v10 = vsub.f32 %v1079_v45, %v670_v7 }
 0x28a   : > { %v695_v11 = vsel %vm646_vm1, %v1171_v8, 0.0  ;;  %v1173_v12 = vpop.eup %1172 }
 0x28b   : > { %1182 = vpow2.f32 %v691_v9  ;;  %v693_v13 = vmul.f32 1.442695, %v678_v10  ;;  %696 = vadd.xlane.f32.xlu0 %v695_v11  ;;  %v701_v15 = vsel %vm646_vm1, %v1173_v12, 0.0 }
 0x28d   : > { %v1175_v14 = vpop.eup %1174  ;;  %1184 = vpow2.f32 %v693_v13 }
 0x28e   : > { %v698_v16 = vsel %vm646_vm1, %v1175_v14, 0.0  ;;  %v1177_v17 = vpop.eup %1176 }
 0x28f   : > { %702 = vadd.xlane.f32.xlu0 %v701_v15  ;;  %699 = vadd.xlane.f32.xlu1 %v698_v16  ;;  %v704_v20 = vsel %vm646_vm1, %v1177_v17, 0.0 }
 0x291   : > { %v1179_v18 = vpop.eup %1178 }
 0x292   : > { %v707_v19 = vsel %vm646_vm1, %v1179_v18, 0.0 }
 0x293   : > { %v1181_v21 = vpop.eup %1180  ;;  %708 = vadd.xlane.f32.xlu0 %v707_v19  ;;  %705 = vadd.xlane.f32.xlu1 %v704_v20 }
 0x294   : > { %v710_v24 = vsel %vm646_vm1, %v1181_v21, 0.0 }
 0x295   : > { %v1183_v22 = vpop.eup %1182 }
 0x296   : > { %v713_v23 = vsel %vm646_vm1, %v1183_v22, 0.0 }
 0x297   : > { %v1185_v25 = vpop.eup %1184  ;;  %714 = vadd.xlane.f32.xlu0 %v713_v23  ;;  %711 = vadd.xlane.f32.xlu1 %v710_v24 }
 0x298   : > { %v716_v26 = vsel %vm646_vm1, %v1185_v25, 0.0 }
 0x29b   : > { %717 = vadd.xlane.f32.xlu1 %v716_v26 }
 0x318   : > { %v697_v27 = vpop.xlane.xlu0 %696 }
 0x319   : > { %1186 = vrcp.f32 %v697_v27 }
 0x31c   : > { %v703_v28 = vpop.xlane.xlu0 %702  ;;  %v700_v29 = vpop.xlane.xlu1 %699 }
 0x31d   : > { %1188 = vrcp.f32 %v703_v28 }
 0x31e   : > { %1190 = vrcp.f32 %v700_v29 }
 0x320   : > { %v709_v30 = vpop.xlane.xlu0 %708  ;;  %v706_v31 = vpop.xlane.xlu1 %705 }
 0x321   : > { %1192 = vrcp.f32 %v709_v30 }
 0x322   : > { %1194 = vrcp.f32 %v706_v31 }
 0x323   : > { %v1187_v32 = vpop.eup %1186 }
 0x324   : > { %v715_v34 = vpop.xlane.xlu0 %714  ;;  %v712_v35 = vpop.xlane.xlu1 %711  ;;  %v727_v33 = vmul.f32 %v1187_v32, %v1171_v8 }
 0x325   : > { %1196 = vrcp.f32 %v715_v34 }
 0x326   : > { %1198 = vrcp.f32 %v712_v35  ;;  %735 = vst.msk [vmem:[%s1480_s7] sm:$0xff] %vm646_vm1, %v727_v33 }
 0x327   : > { %v1189_v37 = vpop.eup %1188 }
 0x328   : > { %v1191_v36 = vpop.eup %1190  ;;  %v729_v38 = vmul.f32 %v1189_v37, %v1173_v12  ;;  %v718_v39 = vpop.xlane.xlu1 %717 }
 0x329   : > { %1200 = vrcp.f32 %v718_v39  ;;  %v728_v40 = vmul.f32 %v1191_v36, %v1175_v14 }
 0x32a   : > { %737 = vst.msk [vmem:[%s1480_s7 + $0x10] sm:$0xff] %vm646_vm1, %v729_v38 }
 0x32b   : > { %v1193_v41 = vpop.eup %1192  ;;  %736 = vst.msk [vmem:[%s1480_s7 + $0x8] sm:$0xff] %vm646_vm1, %v728_v40  ;;  %v743_v42 = vpack.c.bf16 %v728_v40, %v727_v33 }
 0x32c   : > { %v1195_v43 = vpop.eup %1194  ;;  %v731_v44 = vmul.f32 %v1193_v41, %v1179_v18 }
 0x32d   : > { %v730_v45 = vmul.f32 %v1195_v43, %v1177_v17  ;;  %1088 = vmatprep.mubr.msk.bf16.mxu1 %vm646_vm1, %v743_v42 }
 0x32e   : > { %739 = vst.msk [vmem:[%s1480_s7 + $0x20] sm:$0xff] %vm646_vm1, %v731_v44 }
 0x32f   : > { %v1197_v46 = vpop.eup %1196  ;;  %738 = vst.msk [vmem:[%s1480_s7 + $0x18] sm:$0xff] %vm646_vm1, %v730_v45  ;;  %v744_v47 = vpack.c.bf16 %v730_v45, %v729_v38 }
 0x330   : > { %v1199_v48 = vpop.eup %1198  ;;  %v733_v49 = vmul.f32 %v1197_v46, %v1183_v22 }
 0x331   : > { %1089 = vmatmul.mubr.msk.bf16.vlgmr.msra.gmra.mrb[8].mxu1 %vm646_vm1, %v744_v47  ;;  %v732_v50 = vmul.f32 %v1199_v48, %v1181_v21 }
 0x332   : > { %741 = vst.msk [vmem:[%s1480_s7 + $0x30] sm:$0xff] %vm646_vm1, %v733_v49 }
 0x333   : > { %v1201_v51 = vpop.eup %1200  ;;  %740 = vst.msk [vmem:[%s1480_s7 + $0x28] sm:$0xff] %vm646_vm1, %v732_v50  ;;  %v745_v52 = vpack.c.bf16 %v732_v50, %v731_v44 }
 0x334   : > { %v734_v53 = vmul.f32 %v1201_v51, %v1185_v25 }
 0x335   : > { %1092 = vmatprep.mubr.msk.bf16.mxu1 %vm646_vm1, %v745_v52 }
 0x336   : > { %742 = vst.msk [vmem:[%s1480_s7 + $0x38] sm:$0xff] %vm646_vm1, %v734_v53  ;;  %v746_v54 = vpack.c.bf16 %v734_v53, %v733_v49 }
 0x339   : > { %1093 = vmatmul.mubr.msk.bf16.gmra.mrb[12].mxu1 %vm646_vm1, %v746_v54 }
 0x33a   : > { %1215 = shalt.err (!%p1212_p5)
}
 0x33b   : > { %s1216_s26 = scalar_lea.hbm %s1507_s13, 1024  ;;  %s1220_s6 = scalar_lea.hbm %s1576_s4, 2048 }
 0x33c   : > { %p1217_p6 = scmp.ne.s32.totalorder %s1507_s13, %s1216_s26  ;;  %p1221_p10 = scmp.lt.u32.totalorder %s1507_s13, %s1576_s4 }
 0x33d   : > { %p1222_p11 = scmp.lt.u32.totalorder %s1220_s6, %s1216_s26  ;;  %p1224_p13 = scmp.lt.u32.totalorder %s1216_s26, %s1507_s13 }
 0x33e   : > { %p1218_p7 = pnand %p1217_p6, %p1351_p4 }
 0x33f   : > { %p1223_p12 = por %p1222_p11, %p1221_p10 }
 0x340   : > { %p1219_p9 = pneg %p1218_p7 }
 0x341   : > { %p1225_p0 = por %p1224_p13, %p1223_p12 }
 0x343   : > { %p1226_p1 = pnand %p1225_p0, %p1219_p9 }
 0x345   : > { %1229 = shalt.err (!%p1226_p1)
}
 0x346   : > { %s1284_s10 = smov 128   ;;  %s1285_s11 = smov 8  }
 0x347   : > { %1112 = dma.vmem_to_hbm [thread:$0]  (%p1351_p4), %s1509_s9, 1024, %s1507_s13, %s1513_s14, %s1284_s10, %s1284_s10, %s1285_s11  }
 0x348   : > { %s232_s22 = scalar_lea.vmem %s1575_s3, %s1013_s12 }
 0x404   : > { %v1090_v55 = vpop.f32.mrb[8].mxu1 }
 0x405   : > { %830 = vst.msk [vmem:[%s232_s22 + $0x10] sm:$0xff] %vm268_vm0, %v1090_v55  ;;  %v797_v56 = vpop.f32.mrb[9].mxu1 }
 0x406   : > { %828 = vst.msk [vmem:[%s232_s22] sm:$0xff] %vm268_vm0, %v797_v56  ;;  %v1091_v57 = vpop.f32.mrb[10].mxu1 }
 0x407   : > { %831 = vst.msk [vmem:[%s232_s22 + $0x18] sm:$0xff] %vm268_vm0, %v1091_v57  ;;  %v800_v58 = vpop.f32.mrb[11].mxu1 }
 0x408   : > { %829 = vst.msk [vmem:[%s232_s22 + $0x8] sm:$0xff] %vm268_vm0, %v800_v58 }
 0x40c   : > { %v1094_v59 = vpop.f32.mrb[12].mxu1 }
 0x40d   : > { %834 = vst.msk [vmem:[%s232_s22 + $0x30] sm:$0xff] %vm268_vm0, %v1094_v59  ;;  %v813_v60 = vpop.f32.mrb[13].mxu1 }
 0x40e   : > { %832 = vst.msk [vmem:[%s232_s22 + $0x20] sm:$0xff] %vm268_vm0, %v813_v60  ;;  %v1095_v61 = vpop.f32.mrb[14].mxu1 }
 0x40f   : > { %835 = vst.msk [vmem:[%s232_s22 + $0x38] sm:$0xff] %vm268_vm0, %v1095_v61  ;;  %v816_v62 = vpop.f32.mrb[15].mxu1 }
 0x410   : > { %833 = vst.msk [vmem:[%s232_s22 + $0x28] sm:$0xff] %vm268_vm0, %v816_v62 }
 0x411 PF: > { %p1118_p4 = scmp.ge.s32.totalorder %s1280_s20, 2  ;;  %s892_s25 = sand.u32 1, %s1260_s15  }
 0x412   : > { %s893_s29 = scalar_lea.sflag [#allocation5], %s892_s25 }
 0x413   : > { %p1115_p2 = pnand %p1118_p4, %p1358_p8 }
 0x415   : > { %1255 = dma.done.wait (!%p1115_p2), %s893_s29, 1024  }
 0x416   : > { %1257 = vsyncadd (!%p1115_p2), %s893_s29, 4294966272  ;;  %s18_s20 = sadd.s32 1, %s1280_s20   ;;  %s1579_s15 = smov %s1264_s16 }
 0x417   : > { %p15_p3 = scmp.ge.s32.totalorder %s18_s20, 4   ;;  %s1580_s16 = smov %s1268_s17 }
 0x418   : > { %s1581_s17 = smov %s1364_s28  ;;  %s1582_s18 = smov %s1276_s19 }
 0x419   : > { %s1583_s19 = smov %s1585_s23  ;;  %17 = sbr.rel (!%p15_p3) target bundleno = 4 (0x4), region = 84 }
 0x420   :  { %898 = vsyncpa [#allocation5], 1 }
 0x421   :  { %900 = vsyncpa [#allocation5 + $0x1], 1 }

</bundles_post_ra>
